<compile_context>
chip_gen: v7x
topology: tpu7x:2x2x1
jax: 0.10.0
libtpu: 0.0.40
codegen_flags: <defaults>
</compile_context>

<pallas_src>
import functools

import numpy as np
import jax
import jax.numpy as jnp
from jax.experimental import pallas as pl
from jax.experimental.pallas import tpu as pltpu

PW = 16  # create_frame_level_predictions(pw=16, ow=0)


# --------------------------------------------------------------------------- #
# Kernels
# --------------------------------------------------------------------------- #
def _kernel_no_cls(seq_ref, ws_ref, bs_ref, weak_ref, strong_ref, *,
                   grid_h, grid_w, pw):
    bt, n_seq, d = seq_ref.shape
    cp = ws_ref.shape[1]

    # One big MXU matmul over all tokens of the batch tile (bias hoisted below).
    seq = seq_ref[...].reshape(bt * n_seq, d)
    logits = jnp.dot(seq, ws_ref[...],
                     preferred_element_type=jnp.float32)                 # (bt*n_seq, cp)

    # Patch-wise mean over the grid_h axis (reshape + reduce), bias added once.
    grid = logits.reshape(bt, grid_h, grid_w, cp)
    patch_logits = jnp.sum(grid, axis=1) * (1.0 / grid_h) + bs_ref[0]    # (bt, grid_w, cp)

    # Weak = sigmoid(mean over all tokens) == sigmoid(mean over w of patch means).
    weak = jax.nn.sigmoid(jnp.mean(patch_logits, axis=1))                # (bt, cp)
    weak_ref[...] = weak.reshape(bt, 1, cp)

    # Frame-level repeat_interleave(pw): broadcast along the new sublane axis,
    # single dense lane-aligned store of the whole 4-D tile.
    patch_probs = jax.nn.sigmoid(patch_logits)                           # (bt, grid_w, cp)
    strong_ref[...] = jnp.broadcast_to(patch_probs[:, :, None, :],
                                       (bt, grid_w, pw, cp))


def _kernel_cls(cls_ref, seq_ref, ww_ref, bw_ref, ws_ref, bs_ref,
                weak_ref, strong_ref, *, grid_h, grid_w, pw):
    bt, n_seq, d = seq_ref.shape
    cp = ws_ref.shape[1]

    # Weak head: all Bt class tokens in one matmul.
    cls = cls_ref[...].reshape(bt, d)                                    # (bt, d)
    weak_logits = jnp.dot(cls, ww_ref[...],
                          preferred_element_type=jnp.float32) + bw_ref[...]
    weak_ref[...] = jax.nn.sigmoid(weak_logits).reshape(bt, 1, cp)

    # Strong head: one big matmul over all sequence tokens of the batch tile.
    seq = seq_ref[...].reshape(bt * n_seq, d)
    logits = jnp.dot(seq, ws_ref[...],
                     preferred_element_type=jnp.float32)                 # (bt*n_seq, cp)

    grid = logits.reshape(bt, grid_h, grid_w, cp)
    patch_logits = jnp.sum(grid, axis=1) * (1.0 / grid_h) + bs_ref[0]    # (bt, grid_w, cp)
    patch_probs = jax.nn.sigmoid(patch_logits)

    strong_ref[...] = jnp.broadcast_to(patch_probs[:, :, None, :],
                                       (bt, grid_w, pw, cp))


# --------------------------------------------------------------------------- #
# Wrapper
# --------------------------------------------------------------------------- #
def vit_predictor_forward(x, params, *, grid_h, num_classes,
                          use_class_token=False, pw=PW,
                          block_b=None, compute_dtype=None):
    """Returns (weak_probs (B, C), strong_probs (B, C, grid_w*pw))."""
    B, n_total, D = x.shape
    n_seq = n_total - 1 if use_class_token else n_total
    assert n_seq % grid_h == 0
    grid_w = n_seq // grid_h

    ww, bw, ws, bs = params

    # Pad the class dimension to a lane-aligned multiple of 128.
    cp = ((num_classes + 127) // 128) * 128
    pad_c = cp - num_classes
    ww_p = jnp.pad(ww, ((0, 0), (0, pad_c)))
    ws_p = jnp.pad(ws, ((0, 0), (0, pad_c)))
    bw_p = jnp.pad(bw, (0, pad_c)).reshape(1, cp).astype(jnp.float32)
    bs_p = jnp.pad(bs, (0, pad_c)).reshape(1, cp).astype(jnp.float32)

    # Optional bf16 compute path (accumulation stays f32 via preferred_element_type).
    if compute_dtype is not None:
        x = x.astype(compute_dtype)
        ww_p = ww_p.astype(compute_dtype)
        ws_p = ws_p.astype(compute_dtype)

    # Batch tile: fill the MXU M dimension, but keep >=2 parallel grid steps
    # when possible (2 TensorCores per chip on v7x).
    if block_b is None:
        block_b = max(1, min(B, 512 // max(n_seq, 1)))
        if B >= 2 and B // block_b < 2:
            block_b = max(1, B // 2)
    block_b = min(block_b, B)
    bp = ((B + block_b - 1) // block_b) * block_b
    if bp != B:
        x = jnp.pad(x, ((0, bp - B), (0, 0), (0, 0)))

    if use_class_token:
        # Split cls / sequence in the wrapper so the kernel sees aligned blocks.
        cls_x = x[:, 0:1, :]                         # (bp, 1, D)
        seq_x = x[:, 1:, :]                          # (bp, n_seq, D)
        kernel = functools.partial(_kernel_cls, grid_h=grid_h,
                                   grid_w=grid_w, pw=pw)
        inputs = (cls_x, seq_x, ww_p, bw_p, ws_p, bs_p)
        in_specs = [
            pl.BlockSpec((block_b, 1, D), lambda b: (b, 0, 0)),
            pl.BlockSpec((block_b, n_seq, D), lambda b: (b, 0, 0)),
            pl.BlockSpec((D, cp), lambda b: (0, 0)),
            pl.BlockSpec((1, cp), lambda b: (0, 0)),
            pl.BlockSpec((D, cp), lambda b: (0, 0)),
            pl.BlockSpec((1, cp), lambda b: (0, 0)),
        ]
    else:
        kernel = functools.partial(_kernel_no_cls, grid_h=grid_h,
                                   grid_w=grid_w, pw=pw)
        inputs = (x, ws_p, bs_p)
        in_specs = [
            pl.BlockSpec((block_b, n_seq, D), lambda b: (b, 0, 0)),
            pl.BlockSpec((D, cp), lambda b: (0, 0)),
            pl.BlockSpec((1, cp), lambda b: (0, 0)),
        ]

    weak, strong = pl.pallas_call(
        kernel,
        out_shape=(
            jax.ShapeDtypeStruct((bp, 1, cp), jnp.float32),
            jax.ShapeDtypeStruct((bp, grid_w, pw, cp), jnp.float32),
        ),
        grid_spec=pltpu.PrefetchScalarGridSpec(
            num_scalar_prefetch=0,
            grid=(bp // block_b,),
            in_specs=in_specs,
            out_specs=(
                pl.BlockSpec((block_b, 1, cp), lambda b: (b, 0, 0)),
                pl.BlockSpec((block_b, grid_w, pw, cp), lambda b: (b, 0, 0, 0)),
            ),
        ),
        compiler_params=pltpu.CompilerParams(
            dimension_semantics=("parallel",)),
    )(*inputs)

    # Strip batch / class padding; cheap layout plumbing (transpose + reshape)
    # stays in XLA so every in-kernel store is lane-dense and unmasked.
    weak_probs = weak[:B, 0, :num_classes]                               # (B, C)
    strong_4d = strong[:B, :, :, :num_classes]                           # (B, gw, pw, C)
    strong_probs = jnp.transpose(strong_4d, (0, 3, 1, 2)).reshape(
        B, num_classes, grid_w * pw)                                     # (B, C, frames)
    return weak_probs, strong_probs


# --------------------------------------------------------------------------- #
# Pure-JAX reference (matches the PyTorch forward)
# --------------------------------------------------------------------------- #
def vit_predictor_reference(x, params, *, grid_h, num_classes,
                            use_class_token=False, pw=PW):
    ww, bw, ws, bs = params
    if use_class_token:
        cls_tok = x[:, 0]
        weak_probs = jax.nn.sigmoid(cls_tok @ ww + bw)
        seq = x[:, 1:]
        strong_logits = seq @ ws + bs
    else:
        strong_logits = x @ ws + bs
        weak_probs = jax.nn.sigmoid(jnp.mean(strong_logits, axis=1))
    B, N, C = strong_logits.shape
    grid = strong_logits.reshape(B, grid_h, -1, C)
    patch_probs = jax.nn.sigmoid(jnp.mean(grid, axis=1))   # (B, grid_w, C)
    patch_probs = jnp.transpose(patch_probs, (0, 2, 1))    # (B, C, grid_w)
    strong_probs = jnp.repeat(patch_probs, pw, axis=-1)    # repeat_interleave, ow=0
    return weak_probs, strong_probs


def init_params(key, embed_dim, num_classes):
    k1, k2, k3, k4 = jax.random.split(key, 4)
    scale = 1.0 / np.sqrt(embed_dim)
    ww = jax.random.uniform(k1, (embed_dim, num_classes), jnp.float32, -scale, scale)
    bw = jax.random.uniform(k2, (num_classes,), jnp.float32, -scale, scale)
    ws = jax.random.uniform(k3, (embed_dim, num_classes), jnp.float32, -scale, scale)
    bs = jax.random.uniform(k4, (num_classes,), jnp.float32, -scale, scale)
    return ww, bw, ws, bs


if __name__ == "__main__":
    B = 2
    grid_h = 4
    grid_w = 8
    embed_dim = 32
    num_classes = 8

    key = jax.random.PRNGKey(0)
    kp, kx0, kx1 = jax.random.split(key, 3)
    params = init_params(kp, embed_dim, num_classes)

    # ---- use_class_token = False (default), f32 ----
    x = jax.random.normal(kx0, (B, grid_h * grid_w, embed_dim), jnp.float32)
    weak, strong = vit_predictor_forward(
        x, params, grid_h=grid_h, num_classes=num_classes, use_class_token=False)
    jax.block_until_ready((weak, strong))
    weak_r, strong_r = vit_predictor_reference(
        x, params, grid_h=grid_h, num_classes=num_classes, use_class_token=False)
    np.testing.assert_allclose(np.asarray(weak), np.asarray(weak_r), rtol=1e-5, atol=1e-5)
    np.testing.assert_allclose(np.asarray(strong), np.asarray(strong_r), rtol=1e-5, atol=1e-5)
    assert weak.shape == (B, num_classes)
    assert strong.shape == (B, num_classes, grid_w * PW)

    # ---- use_class_token = True, f32 ----
    x_cls = jax.random.normal(kx1, (B, 1 + grid_h * grid_w, embed_dim), jnp.float32)
    weak_c, strong_c = vit_predictor_forward(
        x_cls, params, grid_h=grid_h, num_classes=num_classes, use_class_token=True)
    jax.block_until_ready((weak_c, strong_c))
    weak_cr, strong_cr = vit_predictor_reference(
        x_cls, params, grid_h=grid_h, num_classes=num_classes, use_class_token=True)
    np.testing.assert_allclose(np.asarray(weak_c), np.asarray(weak_cr), rtol=1e-5, atol=1e-5)
    np.testing.assert_allclose(np.asarray(strong_c), np.asarray(strong_cr), rtol=1e-5, atol=1e-5)

    print("KERNEL_OK")
</pallas_src>

<mosaic_0001>
module attributes {stable_mosaic.version = 11 : i64} {
  func.func @_kernel_no_cls(%arg0: i32, %arg1: memref<1x32x32xf32, #tpu.memory_space<vmem>>, %arg2: memref<32x128xf32, #tpu.memory_space<vmem>>, %arg3: memref<1x128xf32, #tpu.memory_space<vmem>>, %arg4: memref<1x1x128xf32, #tpu.memory_space<vmem>>, %arg5: memref<1x8x16x128xf32, #tpu.memory_space<vmem>>) attributes {dimension_semantics = [#tpu.dimension_semantics<parallel>], iteration_bounds = array<i64: 2>, scalar_prefetch = 0 : i64, scratch_operands = 0 : i64, tpu.core_type = #tpu.core_type<tc>, window_params = [{transform_indices = @transform_0, window_bounds = array<i64: 1, 32, 32>}, {pipeline_mode = #tpu.pipeline_mode<synchronous>, transform_indices = @transform_1, window_bounds = array<i64: 32, 128>}, {pipeline_mode = #tpu.pipeline_mode<synchronous>, transform_indices = @transform_2, window_bounds = array<i64: 1, 128>}, {transform_indices = @transform_3, window_bounds = array<i64: 1, 1, 128>}, {transform_indices = @transform_4, window_bounds = array<i64: 1, 8, 16, 128>}]} {
    %c0 = arith.constant 0 : index
    %c0_0 = arith.constant 0 : index
    %c0_1 = arith.constant 0 : index
    %0 = vector.load %arg1[%c0, %c0_0, %c0_1] : memref<1x32x32xf32, #tpu.memory_space<vmem>>, vector<1x32x32xf32>
    %1 = vector.shape_cast %0 : vector<1x32x32xf32> to vector<32x32xf32>
    %c0_2 = arith.constant 0 : index
    %c0_3 = arith.constant 0 : index
    %2 = vector.load %arg2[%c0_2, %c0_3] : memref<32x128xf32, #tpu.memory_space<vmem>>, vector<32x128xf32>
    %cst = arith.constant dense<0.000000e+00> : vector<32x128xf32>
    %3 = tpu.matmul %1, %2, %cst {dimension_numbers = #tpu.dot_dimension_numbers<[1], [0], [0], [1], [0, 0, 1, 1], [], []>} : vector<32x32xf32>, vector<32x128xf32>, vector<32x128xf32> -> vector<32x128xf32>
    %4 = vector.shape_cast %3 : vector<32x128xf32> to vector<1x4x8x128xf32>
    %cst_4 = arith.constant dense<0.000000e+00> : vector<1x8x128xf32>
    %5 = vector.multi_reduction <add>, %4, %cst_4 [1] : vector<1x4x8x128xf32> to vector<1x8x128xf32>
    %cst_5 = arith.constant 2.500000e-01 : f32
    %6 = vector.broadcast %cst_5 : f32 to vector<1x8x128xf32>
    %7 = arith.mulf %5, %6 : vector<1x8x128xf32>
    %c0_6 = arith.constant 0 : index
    %c0_7 = arith.constant 0 : index
    %8 = vector.load %arg3[%c0_6, %c0_7] : memref<1x128xf32, #tpu.memory_space<vmem>>, vector<1x128xf32>
    %9 = vector.shape_cast %8 : vector<1x128xf32> to vector<128xf32>
    %10 = vector.shape_cast %9 : vector<128xf32> to vector<1x1x128xf32>
    %11 = vector.broadcast %10 : vector<1x1x128xf32> to vector<1x8x128xf32>
    %12 = arith.addf %7, %11 : vector<1x8x128xf32>
    %cst_8 = arith.constant dense<0.000000e+00> : vector<1x128xf32>
    %13 = vector.multi_reduction <add>, %12, %cst_8 [1] : vector<1x8x128xf32> to vector<1x128xf32>
    %cst_9 = arith.constant 8.000000e+00 : f32
    %14 = vector.broadcast %cst_9 : f32 to vector<1x128xf32>
    %15 = arith.divf %13, %14 : vector<1x128xf32>
    %16 = arith.negf %15 : vector<1x128xf32>
    %17 = math.exp %16 : vector<1x128xf32>
    %cst_10 = arith.constant 1.000000e+00 : f32
    %18 = vector.broadcast %cst_10 : f32 to vector<1x128xf32>
    %19 = arith.addf %18, %17 : vector<1x128xf32>
    %20 = arith.divf %18, %19 : vector<1x128xf32>
    %21 = vector.shape_cast %20 : vector<1x128xf32> to vector<1x1x128xf32>
    %c0_11 = arith.constant 0 : index
    %c0_12 = arith.constant 0 : index
    %c0_13 = arith.constant 0 : index
    %22 = vector.load %arg4[%c0_11, %c0_12, %c0_13] : memref<1x1x128xf32, #tpu.memory_space<vmem>>, vector<1x1x128xf32>
    tpu.vector_store %arg4[%c0_11, %c0_12, %c0_13], %21 {strides = array<i32>} : memref<1x1x128xf32, #tpu.memory_space<vmem>>, vector<1x1x128xf32>,
    %23 = arith.negf %12 : vector<1x8x128xf32>
    %24 = math.exp %23 : vector<1x8x128xf32>
    %cst_14 = arith.constant 1.000000e+00 : f32
    %25 = vector.broadcast %cst_14 : f32 to vector<1x8x128xf32>
    %26 = arith.addf %25, %24 : vector<1x8x128xf32>
    %27 = arith.divf %25, %26 : vector<1x8x128xf32>
    %28 = vector.shape_cast %27 : vector<1x8x128xf32> to vector<1x8x1x128xf32>
    %29 = vector.shape_cast %28 : vector<1x8x1x128xf32> to vector<1x8x1x128xf32>
    %30 = vector.broadcast %29 : vector<1x8x1x128xf32> to vector<1x8x16x128xf32>
    %c0_15 = arith.constant 0 : index
    %c0_16 = arith.constant 0 : index
    %c0_17 = arith.constant 0 : index
    %c0_18 = arith.constant 0 : index
    %31 = vector.load %arg5[%c0_15, %c0_16, %c0_17, %c0_18] : memref<1x8x16x128xf32, #tpu.memory_space<vmem>>, vector<1x8x16x128xf32>
    tpu.vector_store %arg5[%c0_15, %c0_16, %c0_17, %c0_18], %30 {strides = array<i32>} : memref<1x8x16x128xf32, #tpu.memory_space<vmem>>, vector<1x8x16x128xf32>,
    return
  }
  func.func @transform_0(%arg0: i32) -> (i32, i32, i32) {
    %c0_i32 = arith.constant 0 : i32
    %c0_i32_0 = arith.constant 0 : i32
    %c0_i32_1 = arith.constant 0 : i32
    return %arg0, %c0_i32, %c0_i32_0 : i32, i32, i32
  }
  func.func @transform_1(%arg0: i32) -> (i32, i32) {
    %c0_i32 = arith.constant 0 : i32
    %c0_i32_0 = arith.constant 0 : i32
    %c0_i32_1 = arith.constant 0 : i32
    return %c0_i32, %c0_i32_0 : i32, i32
  }
  func.func @transform_2(%arg0: i32) -> (i32, i32) {
    %c0_i32 = arith.constant 0 : i32
    %c0_i32_0 = arith.constant 0 : i32
    %c0_i32_1 = arith.constant 0 : i32
    return %c0_i32, %c0_i32_0 : i32, i32
  }
  func.func @transform_3(%arg0: i32) -> (i32, i32, i32) {
    %c0_i32 = arith.constant 0 : i32
    %c0_i32_0 = arith.constant 0 : i32
    %c0_i32_1 = arith.constant 0 : i32
    return %arg0, %c0_i32, %c0_i32_0 : i32, i32, i32
  }
  func.func @transform_4(%arg0: i32) -> (i32, i32, i32, i32) {
    %c0_i32 = arith.constant 0 : i32
    %c0_i32_0 = arith.constant 0 : i32
    %c0_i32_1 = arith.constant 0 : i32
    %c0_i32_2 = arith.constant 0 : i32
    return %arg0, %c0_i32, %c0_i32_0, %c0_i32_1 : i32, i32, i32, i32
  }
}

</mosaic_0001>

<bundles_post_ra>
// kernel: tpu_custom_call.1
= control target key start
LH: loop header
LB: loop body
LE: loop exit
PB: predicated region body
PF: predicated region fallthrough
CT: control target
= control target key end

     0   :  { %10 = vsyncpa [#allocation3], 0  ;;  %s1209_s0 = inlined_call_operand.hbm [shape: f32[2,32,32], index: 0, kind: input, shape index: {}]   ;;  %s1210_s1 = inlined_call_operand.hbm [shape: f32[32,128], index: 1, kind: input, shape index: {}]   ;;  %s1211_s2 = inlined_call_operand.vmem [shape: f32[1,128], index: 2, kind: input, shape index: {}]   ;;  %s1212_s3 = inlined_call_operand.hbm [shape: f32[2,1,128], index: 3, kind: output, shape index: {0}]   ;;  %s1213_s4 = inlined_call_operand.hbm [shape: f32[2,8,16,128], index: 4, kind: output, shape index: {1}]  }
   0x1   :  { %12 = vsyncpa [#allocation3 + $0x1], 0 }
   0x2   :  { %13 = vsyncpa [#allocation6], 0 }
   0x3   :  { %14 = vsyncpa [#allocation4], 0 }
   0x4   :  { %16 = vsyncpa [#allocation4 + $0x1], 0 }
   0x5   :  { %17 = vsyncpa [#allocation9], 0 }
   0x6   :  { %19 = vsyncpa [#allocation9 + $0x1], 0  ;;  %s959_s15 = smov 0   ;;  %s961_s16 = smov 0  }
   0x7   :  { %s963_s17 = smov 0   ;;  %s965_s18 = smov 0  }
   0x8 LB: > { %s980_s19 = sadd.s32 4294967295, %s923_s18   ;;  %s628_s20 = sadd.s32 4294967294, %s923_s18   ;;  %s923_s18 = sphi %s965_s18, %s1233_s18   ;;  %s919_s17 = sphi %s963_s17, %s1232_s17   ;;  %s915_s16 = sphi %s961_s16, %s1231_s16   ;;  %s911_s15 = sphi %s959_s15, %s1230_s15  }
   0x9   : > { %p45_p0 = scmp.ne.s32.totalorder %s915_s16, %s911_s15  ;;  %p1214_p1 = scmp.eq.s32.totalorder %s980_s19, 0 }
   0xa   : > { %p117_p3 = scmp.eq.s32.totalorder %s628_s20, 1  ;;  %p629_p5 = scmp.ge.s32.totalorder %s923_s18, 1 }
   0xb   : > { %p989_p4 = por %p1214_p1, %p45_p0  ;;  %p150_p7 = scmp.lt.s32.totalorder %s923_s18, 3 }
   0xc   : > { %p994_p6 = por %p117_p3, %p45_p0  ;;  %s925_s24 = smov [#allocation5]  }
   0xd   : > { %s1217_s21 = scalar_select %p989_p4, 1, 0 }
   0xe   : > { %s1218_s22 = scalar_select %p994_p6, 1, 0 }
   0xf   : > { %p999_p8 = pnand %p629_p5, %p150_p7  ;;  %s162_s25 = sshll.u32 %s925_s24, 4  ;;  %s1003_s25 = int_to_ptr.vmem [resolvable:$true] %s162_s25 }
  0x10   : > { %s1015_s27 = sadd.s32 1, %s923_s18   ;;  %s32_s28 = sadd.s32 1, %s919_s17 }
  0x11   : > { %s1219_s23 = scalar_select %p999_p8, 1, 0 }
  0x12   : > { %p698_p9 = pneg %p999_p8  ;;  %s29_s29 = ssub.s32 %s923_s18, %s1015_s27 }
  0x13   : > { %s763_s6 = scalar_lea.hbm %s1210_s1, 512 }
  0x14   : > { %p1010_p11 = pnand %p698_p9, %p1214_p1  ;;  %p764_p12 = scmp.ne.s32.totalorder %s1210_s1, %s763_s6 }
  0x15   : > { %p770_p5 = scmp.lt.u32.totalorder %s763_s6, %s1210_s1 }
  0x16   : > { %p765_p13 = pneg %p1010_p11 }
  0x18   : > { %p766_p0 = pnand %p765_p13, %p764_p12 }
  0x1a   : > { %p767_p3 = pneg %p766_p0 }
  0x1c   : > { %p772_p7 = pnand %p770_p5, %p767_p3 }
  0x1e   : > { %775 = shalt.err (!%p772_p7)
}
  0x1f   : > { %s776_s11 = scalar_lea.vmem %s1003_s25, 512  ;;  %p784_p2 = scmp.lt.s32.totalorder %s1003_s25, %s1003_s25 }
  0x20   : > { %p777_p9 = scmp.ne.s32.totalorder %s1003_s25, %s776_s11  ;;  %p785_p6 = scmp.lt.s32.totalorder %s776_s11, %s776_s11 }
  0x22   : > { %p779_p10 = pnand %p777_p9, %p765_p13  ;;  %p786_p4 = por %p785_p6, %p784_p2 }
  0x24   : > { %p780_p1 = pneg %p779_p10 }
  0x26   : > { %p787_p8 = pnand %p786_p4, %p780_p1 }
  0x28   : > { %790 = shalt.err (!%p787_p8)
}
  0x29   : > { %s926_s12 = smov 128   ;;  %s927_s13 = smov 8  }
  0x2a   : > { %701 = dma.hbm_to_vmem [thread:$0]  (!%p1010_p11), %s1210_s1, 512, %s1003_s25, [#allocation6], %s926_s12, %s926_s12, %s927_s13  }
  0x2b   : > { %p30_p1 = scmp.eq.s32.totalorder %s29_s29, 0  ;;  %p39_p2 = scmp.ne.s32.totalorder %s919_s17, %s915_s16 }
  0x2c   : > { %p40_p4 = scmp.eq.s32.totalorder %s923_s18, 0  ;;  %p714_p6 = scmp.lt.s32.totalorder %s923_s18, 2 }
  0x2d   : > { %s1049_s24 = scalar_select %p30_p1, %s919_s17, %s32_s28  }
  0x2e   : > { %p41_p8 = por %p40_p4, %p39_p2  ;;  %p1221_p10 = scmp.eq.s32.totalorder %s980_s19, 1 }
  0x2f   : > { %s179_s26 = sand.u32 1, %s919_s17   ;;  %s652_s5 = sshll.u32 %s923_s18, 9 }
  0x30   : > { %p1053_p12 = por %p1221_p10, %p39_p2  ;;  %s632_s6 = sshll.u32 %s179_s26, 5 }
  0x31   : > { %s1062_s9 = scalar_lea.hbm %s1209_s0, %s652_s5  ;;  %s183_s25 = scalar_lea.vmem [#allocation2], %s632_s6 }
  0x32   : > { %s190_s28 = sshll.u32 %s183_s25, 4  ;;  %p1064_p11 = pnand %p714_p6, %p41_p8  ;;  %s1068_s28 = int_to_ptr.vmem [resolvable:$true] %s190_s28 }
  0x33   : > { %s1070_s10 = scalar_lea.sflag [#allocation3], %s179_s26  ;;  %s791_s11 = scalar_lea.hbm %s1062_s9, 512 }
  0x34   : > { %p792_p13 = scmp.ne.s32.totalorder %s1062_s9, %s791_s11  ;;  %p793_p0 = pneg %p1064_p11 }
  0x35   : > { %s796_s5 = scalar_lea.hbm %s1209_s0, 1024  ;;  %p797_p7 = scmp.lt.u32.totalorder %s1062_s9, %s1209_s0 }
  0x36   : > { %p794_p3 = pnand %p793_p0, %p792_p13  ;;  %p798_p9 = scmp.lt.u32.totalorder %s796_s5, %s791_s11 }
  0x37   : > { %p800_p2 = scmp.lt.u32.totalorder %s791_s11, %s1062_s9 }
  0x38   : > { %p795_p5 = pneg %p794_p3  ;;  %p799_p1 = por %p798_p9, %p797_p7 }
  0x3a   : > { %p801_p4 = por %p800_p2, %p799_p1 }
  0x3c   : > { %p802_p6 = pnand %p801_p4, %p795_p5 }
  0x3e   : > { %805 = shalt.err (!%p802_p6)
}
  0x3f   : > { %s806_s26 = scalar_lea.vmem %s1068_s28, 512  ;;  %s928_s8 = smov [#allocation2]  }
  0x40   : > { %p807_p8 = scmp.ne.s32.totalorder %s1068_s28, %s806_s26  ;;  %s811_s25 = sshll.u32 %s928_s8, 4  ;;  %s812_s25 = int_to_ptr.vmem [resolvable:$false] %s811_s25 }
  0x41   : > { %s813_s14 = scalar_lea.vmem %s812_s25, 1024  ;;  %p814_p3 = scmp.lt.s32.totalorder %s1068_s28, %s812_s25 }
  0x42   : > { %p809_p10 = pnand %p807_p8, %p793_p0  ;;  %p815_p7 = scmp.lt.s32.totalorder %s813_s14, %s806_s26 }
  0x44   : > { %p810_p13 = pneg %p809_p10  ;;  %p816_p9 = por %p815_p7, %p814_p3 }
  0x46   : > { %p817_p1 = pnand %p816_p9, %p810_p13 }
  0x48   : > { %820 = shalt.err (!%p817_p1)
}
  0x49   : > { %705 = dma.hbm_to_vmem [thread:$0]  (!%p1064_p11), %s1062_s9, 512, %s1068_s28, %s1070_s10, %s926_s12, %s926_s12, %s927_s13  }
  0x4a   : > { %p1224_p0 = scmp.ne.s32.totalorder %s1219_s23, 0 }
  0x4b   : > { %s1104_s11 = sand.u32 (!%p1224_p0), 1, %s915_s16   ;;  %p1225_p5 = scmp.ne.s32.totalorder (!%p1224_p0), %s1217_s21, 0 }
  0x4c   : > { %202 = sbr.rel (%p1224_p0) target bundleno = 400 (0x190), region = 32  ;;  %s636_s20 = sshll.u32 (!%p1224_p0), %s1104_s11, 5 }
  0x4d   : > { %s205_s5 = scalar_lea.sflag (!%p1224_p0), [#allocation3], %s1104_s11  ;;  %s208_s6 = scalar_lea.vmem (!%p1224_p0), [#allocation2], %s636_s20 }
  0x53   : > { %894 = dma.done.wait (%p1225_p5), %s205_s5, 512  }
  0x54   : > { %896 = vsyncadd (%p1225_p5), %s205_s5, 4294966784  ;;  %p1226_p2 = scmp.eq.s32.totalorder %s980_s19, 0 }
  0x56   : > { %898 = dma.done.wait (%p1226_p2), [#allocation6], 512   ;;  %p1227_p11 = pmov %p1226_p2 }
  0x57   : > { %vm249_vm0 = vcmask 261120   ;;  %v245_v0 = vld [vmem:[#allocation5] sm:$0xff]  ;;  %v246_v1 = vld [vmem:[#allocation5 + $0x8] sm:$0xff]  ;;  %v247_v2 = vld [vmem:[#allocation5 + $0x10] sm:$0xff]  ;;  %v929_v31 = vmov 1966171168   ;;  %v385_v33 = vlaneseq }
  0x58   : > { %900 = vsyncadd (%p1227_p11), [#allocation6], 4294966784  ;;  %v676_v3 = vpack.c.bf16 %v246_v1, %v245_v0  ;;  %v248_v4 = vld [vmem:[#allocation5 + $0x18] sm:$0xff]  ;;  %v241_v5 = vld [vmem:[%s208_s6] sm:$0xff]  ;;  %v383_v32 = vunpack.c.l.s4 %v929_v31  ;;  %s638_s12 = sshll.u32 %s1104_s11, 7  ;;  %s653_s13 = sshll.u32 %s980_s19, 11 }
  0x59   : > { %v680_v6 = vpack.c.bf16 %v248_v4, %v247_v2  ;;  %670 = vmatprep.mubr.msk.f32.mxu0 %vm249_vm0, %v241_v5  ;;  %v243_v7 = vld [vmem:[%s208_s6 + $0x10] sm:$0xff]  ;;  %v242_v8 = vld [vmem:[%s208_s6 + $0x8] sm:$0xff]  ;;  %v244_v9 = vld [vmem:[%s208_s6 + $0x18] sm:$0xff]  ;;  %v386_v35 = vshrl.u32 %v385_v33, 7  ;;  %s240_s9 = scalar_lea.vmem [#allocation8], %s638_s12  ;;  %s647_s29 = sshll.u32 %s980_s19, 4 }
  0x5a   : > { %677 = vmatprep.subr.bf16.mxu0 %v676_v3  ;;  %684 = vmatprep.subr.bf16.mxu1 %v676_v3  ;;  %v643_v17 = vld [vmem:[%s1211_s2] ss:$0 sm:$0xff]  ;;  %v384_v34 = vunpack.c.0.s8 %v383_v32  ;;  %s517_s28 = sshll.u32 %s240_s9, 4  ;;  %s233_s10 = scalar_lea.vmem [#allocation7], %s1104_s11  ;;  %s1134_s28 = int_to_ptr.vmem [resolvable:$true] %s517_s28 }
  0x5b   : > { %679 = vmatpush3.bf16.msra.mxu0 %v676_v3  ;;  %686 = vmatpush3.bf16.msra.mxu1 %v676_v3  ;;  %v432_v42 = vsub.s32 0, %v386_v35  ;;  %s504_s7 = sshll.u32 %s233_s10, 4  ;;  %s1132_s25 = scalar_lea.hbm %s1213_s4, %s653_s13  ;;  %s1141_s7 = int_to_ptr.vmem [resolvable:$true] %s504_s7 }
  0x5c   : > { %681 = vmatprep.subr.bf16.mxu0 %v680_v6  ;;  %685 = vmatprep.subr.bf16.mxu1 %v680_v6  ;;  %v387_v36 = vsub.s32 %v384_v34, %v386_v35  ;;  %s1139_s20 = scalar_lea.hbm %s1212_s3, %s647_s29  ;;  %s491_s5 = scalar_lea.sflag [#allocation9], %s1104_s11 }
  0x5d   : > { %673 = vmatprep.mubr.msk.f32.mxu1 %vm249_vm0, %v243_v7  ;;  %s821_s6 = scalar_lea.vmem %s1134_s28, 2048  ;;  %s930_s21 = smov [#allocation8]  }
  0x5e   : > { %p822_p4 = scmp.ne.s32.totalorder %s1134_s28, %s821_s6  ;;  %s825_s23 = sshll.u32 %s930_s21, 4  ;;  %s826_s23 = int_to_ptr.vmem [resolvable:$false] %s825_s23 }
  0x5f   : > { %683 = vmatpush3.bf16.msra.mxu0 %v680_v6  ;;  %687 = vmatpush3.bf16.msra.mxu1 %v680_v6  ;;  %s827_s12 = scalar_lea.vmem %s826_s23, 4096  ;;  %p828_p10 = scmp.lt.s32.totalorder %s1134_s28, %s826_s23 }
  0x60   : > { %p823_p6 = pnand %p822_p4, %p1053_p12  ;;  %p829_p13 = scmp.lt.s32.totalorder %s827_s12, %s821_s6 }
  0x62   : > { %671 = vmatmul.mubr.msk.f32.vlgmr.msra.gmra.mrb[0].mxu0 %vm249_vm0, %v242_v8  ;;  %674 = vmatmul.mubr.msk.f32.vlgmr.msra.gmra.mrb[0].mxu1 %vm249_vm0, %v244_v9  ;;  %p824_p8 = pneg %p823_p6  ;;  %p830_p3 = por %p829_p13, %p828_p10 }
  0x64   : > { %p831_p7 = pnand %p830_p3, %p824_p8 }
 0x135   : > { %v672_v10 = vpop.f32.mrb[0].mxu0  ;;  %v675_v11 = vpop.f32.mrb[0].mxu1 }
 0x136   : > { %v328_v12 = vpop.f32.mrb[1].mxu0  ;;  %v338_v13 = vpop.f32.mrb[1].mxu1 }
 0x137   : > { %v347_v14 = vadd.f32 %v672_v10, %v328_v12 }
 0x139   : > { %v348_v15 = vadd.f32 %v347_v14, %v338_v13 }
 0x13b   : > { %v349_v16 = vadd.f32 %v675_v11, %v348_v15 }
 0x13d   : > { %v350_v18 = vmul.f32 0.25, %v349_v16 }
 0x13f   : > { %v358_v19 = vadd.f32 %v643_v17, %v350_v18 }
 0x141   : > { %v359_v20 = vrot.slane %v358_v19, 4  ;;  %v645_v21 = vmul.f32 -1.442695, %v358_v19 }
 0x143   : > { %v360_v22 = vadd.f32 %v359_v20, %v358_v19  ;;  %755 = vpow2.f32 %v645_v21 }
 0x145   : > { %v361_v23 = vrot.slane %v360_v22, 2 }
 0x147   : > { %v362_v24 = vadd.f32 %v361_v23, %v360_v22 }
 0x149   : > { %v363_v25 = vrot.slane %v362_v24, 1 }
 0x14b   : > { %v364_v26 = vadd.f32 %v363_v25, %v362_v24 }
 0x14d   : > { %v756_v27 = vpop.eup %755  ;;  %v644_v28 = vmul.f32 -0.125, %v364_v26 }
 0x14e   : > { %v377_v29 = vadd.f32 1.0, %v756_v27 }
 0x14f   : > { %v368_v30 = vmul.f32 1.442695, %v644_v28 }
 0x150   : > { %757 = vrcp.f32 %v377_v29 }
 0x151   : > { %759 = vpow2.f32 %v368_v30 }
 0x15a   : > { %v758_v37 = vpop.eup %757 }
 0x15b   : > { %v760_v38 = vpop.eup %759  ;;  %v381_v39 = vcombine.high %v758_v37, %v758_v37  ;;  %v388_v40 = vrot.slane %v758_v37, %v387_v36 }
 0x15c   : > { %v370_v41 = vadd.f32 1.0, %v760_v38 }
 0x15d   : > { %v395_v43 = vrot.slane %v381_v39, %v387_v36  ;;  %v396_v44 = vcombine.high %v388_v40, %v388_v40  ;;  %v404_v45 = vrot.slane %v388_v40, %v387_v36 }
 0x15e   : > { %761 = vrcp.f32 %v370_v41 }
 0x15f   : > { %v397_v46 = vcombine.high %v395_v43, %v395_v43  ;;  %v411_v47 = vrot.slane %v395_v43, %v387_v36  ;;  %v418_v48 = vrot.slane %v396_v44, %v387_v36  ;;  %v426_v49 = vcombine.high %v404_v45, %v404_v45 }
 0x160   : > { %v433_v50 = vrot.slane %v404_v45, %v432_v42 }
 0x161   : > { %v425_v51 = vrot.slane %v397_v46, %v387_v36  ;;  %v427_v52 = vcombine.high %v411_v47, %v411_v47  ;;  %v428_v53 = vcombine.high %v418_v48, %v418_v48  ;;  %v437_v54 = vrot.slane %v418_v48, %v432_v42 }
 0x162   : > { %v441_v55 = vrot.slane %v426_v49, %v432_v42  ;;  %v449_v56 = vrot.slane %v411_v47, %v432_v42  ;;  %470 = vst [vmem:[%s240_s9] sm:$0xff] %v433_v50  ;;  %471 = vst [vmem:[%s240_s9 + $0x8] sm:$0xff] %v433_v50 }
 0x163   : > { %v429_v57 = vcombine.high %v425_v51, %v425_v51  ;;  %v445_v58 = vrot.slane %v428_v53, %v432_v42  ;;  %v453_v59 = vrot.slane %v425_v51, %v432_v42  ;;  %v457_v60 = vrot.slane %v427_v52, %v432_v42  ;;  %472 = vst [vmem:[%s240_s9 + $0x10] sm:$0xff] %v437_v54 }
 0x164   : > { %473 = vst [vmem:[%s240_s9 + $0x18] sm:$0xff] %v437_v54  ;;  %474 = vst [vmem:[%s240_s9 + $0x20] sm:$0xff] %v441_v55 }
 0x165   : > { %475 = vst [vmem:[%s240_s9 + $0x28] sm:$0xff] %v441_v55  ;;  %478 = vst [vmem:[%s240_s9 + $0x40] sm:$0xff] %v449_v56  ;;  %v461_v61 = vrot.slane %v429_v57, %v432_v42 }
 0x166   : > { %479 = vst [vmem:[%s240_s9 + $0x48] sm:$0xff] %v449_v56  ;;  %476 = vst [vmem:[%s240_s9 + $0x30] sm:$0xff] %v445_v58 }
 0x167   : > { %477 = vst [vmem:[%s240_s9 + $0x38] sm:$0xff] %v445_v58  ;;  %480 = vst [vmem:[%s240_s9 + $0x50] sm:$0xff] %v453_v59 }
 0x168   : > { %481 = vst [vmem:[%s240_s9 + $0x58] sm:$0xff] %v453_v59  ;;  %482 = vst [vmem:[%s240_s9 + $0x60] sm:$0xff] %v457_v60  ;;  %v762_v62 = vpop.eup %761 }
 0x169   : > { %483 = vst [vmem:[%s240_s9 + $0x68] sm:$0xff] %v457_v60  ;;  %484 = vst [vmem:[%s240_s9 + $0x70] sm:$0xff] %v461_v61 }
 0x16a   : > { %485 = vst [vmem:[%s240_s9 + $0x78] sm:$0xff] %v461_v61 }
 0x16b   : > { %834 = shalt.err (!%p831_p7)
}
 0x16c   : > { %s835_s13 = scalar_lea.hbm %s1132_s25, 2048  ;;  %s839_s26 = scalar_lea.hbm %s1213_s4, 4096 }
 0x16d   : > { %p836_p9 = scmp.ne.s32.totalorder %s1132_s25, %s835_s13  ;;  %p840_p5 = scmp.lt.u32.totalorder %s1132_s25, %s1213_s4 }
 0x16e   : > { %p841_p2 = scmp.lt.u32.totalorder %s839_s26, %s835_s13  ;;  %p843_p4 = scmp.lt.u32.totalorder %s835_s13, %s1132_s25 }
 0x16f   : > { %p837_p1 = pnand %p836_p9, %p1053_p12 }
 0x170   : > { %p842_p11 = por %p841_p2, %p840_p5 }
 0x171   : > { %p838_p0 = pneg %p837_p1 }
 0x172   : > { %p844_p6 = por %p843_p4, %p842_p11 }
 0x174   : > { %p845_p8 = pnand %p844_p6, %p838_p0 }
 0x176   : > { %848 = shalt.err (!%p845_p8)
}
 0x177   : > { %s931_s14 = smov 128   ;;  %s932_s6 = smov 8   ;;  %373 = vst [vmem:[%s233_s10] sm:$0x1] %v762_v62 }
 0x178   : > { %695 = dma.vmem_to_hbm [thread:$0]  (%p1053_p12), %s1134_s28, 2048, %s1132_s25, %s491_s5, %s931_s14, %s931_s14, %s932_s6  }
 0x179   : > { %s487_s21 = scalar_lea.sflag [#allocation4], %s1104_s11  ;;  %s849_s23 = scalar_lea.vmem %s1141_s7, 16 }
 0x17a   : > { %p850_p10 = scmp.ne.s32.totalorder %s1141_s7, %s849_s23  ;;  %s933_s12 = smov [#allocation7]  }
 0x17b   : > { %s853_s13 = sshll.u32 %s933_s12, 4  ;;  %s854_s13 = int_to_ptr.vmem [resolvable:$false] %s853_s13 }
 0x17c   : > { %p851_p13 = pnand %p850_p10, %p1053_p12  ;;  %s855_s9 = scalar_lea.vmem %s854_s13, 32 }
 0x17d   : > { %p856_p7 = scmp.lt.s32.totalorder %s1141_s7, %s854_s13  ;;  %p857_p9 = scmp.lt.s32.totalorder %s855_s9, %s849_s23 }
 0x17e   : > { %p852_p3 = pneg %p851_p13 }
 0x17f   : > { %p858_p1 = por %p857_p9, %p856_p7 }
 0x181   : > { %p859_p0 = pnand %p858_p1, %p852_p3 }
 0x183   : > { %862 = shalt.err (!%p859_p0)
}
 0x184   : > { %s863_s11 = scalar_lea.hbm %s1139_s20, 16  ;;  %s867_s25 = scalar_lea.hbm %s1212_s3, 32 }
 0x185   : > { %p864_p5 = scmp.ne.s32.totalorder %s1139_s20, %s863_s11  ;;  %p868_p4 = scmp.lt.u32.totalorder %s1139_s20, %s1212_s3 }
 0x186   : > { %p869_p6 = scmp.lt.u32.totalorder %s867_s25, %s863_s11  ;;  %p871_p10 = scmp.lt.u32.totalorder %s863_s11, %s1139_s20 }
 0x187   : > { %p865_p2 = pnand %p864_p5, %p1053_p12 }
 0x188   : > { %p870_p8 = por %p869_p6, %p868_p4 }
 0x189   : > { %p866_p11 = pneg %p865_p2 }
 0x18a   : > { %p872_p13 = por %p871_p10, %p870_p8 }
 0x18c   : > { %p873_p3 = pnand %p872_p13, %p866_p11 }
 0x18e   : > { %876 = shalt.err (!%p873_p3)
}
 0x18f   : > { %694 = dma.vmem_to_hbm [thread:$0]  (%p1053_p12), %s1141_s7, 16, %s1139_s20, %s487_s21  }
 0x190 PF: > { %s532_s26 = sand.u32 1, %s911_s15   ;;  %p1228_p7 = scmp.ne.s32.totalorder %s1218_s22, 0 }
 0x191   : > { %p1229_p9 = scmp.ge.s32.totalorder %s923_s18, 2  ;;  %s533_s8 = scalar_lea.sflag [#allocation4], %s532_s26 }
 0x193   : > { %p707_p1 = pnand %p1229_p9, %p1228_p7 }
 0x195   : > { %902 = dma.done.wait (!%p707_p1), %s533_s8, 16  }
 0x196   : > { %904 = vsyncadd (!%p707_p1), %s533_s8, 4294967280  ;;  %s541_s19 = scalar_lea.sflag [#allocation9], %s532_s26 }
 0x197   : > { %906 = dma.done.wait (!%p707_p1), %s541_s19, 2048  }
 0x198   : > { %908 = vsyncadd (!%p707_p1), %s541_s19, 4294965248  ;;  %p22_p12 = scmp.ge.s32.totalorder %s1015_s27, 4   ;;  %s1230_s15 = smov %s915_s16 }
 0x199   : > { %s1231_s16 = smov %s919_s17  ;;  %s1232_s17 = smov %s1049_s24 }
 0x19a   : > { %s1233_s18 = smov %s1015_s27  ;;  %24 = sbr.rel (!%p22_p12) target bundleno = 8 (0x8), region = 98 }
 0x1a1   :  { %546 = vsyncpa [#allocation3], 1 }
 0x1a2   :  { %548 = vsyncpa [#allocation3 + $0x1], 1 }
 0x1a3   :  { %549 = vsyncpa [#allocation6], 1 }
 0x1a4   :  { %550 = vsyncpa [#allocation4], 1 }
 0x1a5   :  { %552 = vsyncpa [#allocation4 + $0x1], 1 }
 0x1a6   :  { %553 = vsyncpa [#allocation9], 1 }
 0x1a7   :  { %555 = vsyncpa [#allocation9 + $0x1], 1 }

</bundles_post_ra>
